<compile_context>
chip_gen: v6e
topology: v6e:2x2x1
jax: 0.10.0
libtpu: 0.0.40
codegen_flags: <defaults>
</compile_context>

<pallas_src>
import functools

import jax
import jax.numpy as jnp
from jax import lax
from jax.experimental import pallas as pl
from jax.experimental.pallas import tpu as pltpu


def _round_up(n, m):
    return ((n + m - 1) // m) * m


def _bit_estimator_kernel(x_ref, p_ref, o_ref, *, chunk, n_chunks):
    # x_ref / o_ref: (tile_n, C); p_ref: (16, C) derived params (rows 11..15 unused).
    p = p_ref[...].astype(jnp.float32)
    sph1, b1, ta1 = p[0:1, :], p[1:2, :], p[2:3, :]
    sph2, b2, ta2 = p[3:4, :], p[4:5, :], p[5:6, :]
    sph3, b3, ta3 = p[6:7, :], p[7:8, :], p[8:9, :]
    sph4h, b4h = p[9:10, :], p[10:11, :]     # already scaled by 0.5 at precompute

    def nonfinal(x, sp_h, b, tanh_a):
        # x = x * softplus(h) + b ; return x + tanh(x) * tanh(a)
        # (softplus(h) and tanh(a) are precomputed -> sp_h, tanh_a)
        xt = x * sp_h + b
        return xt + jnp.tanh(xt) * tanh_a

    def body(i, carry):
        start = pl.multiple_of(i * chunk, chunk)      # chunk is a multiple of 8
        x = x_ref[pl.ds(start, chunk), :].astype(jnp.float32)
        x = nonfinal(x, sph1, b1, ta1)
        x = nonfinal(x, sph2, b2, ta2)
        x = nonfinal(x, sph3, b3, ta3)
        # f4 (final): sigmoid(x*softplus(h) + b) == 0.5*tanh(0.5*(x*softplus(h)+b)) + 0.5
        # with the 0.5 folded into sph4h / b4h -> one tanh, no exp+divide.
        x = 0.5 * jnp.tanh(x * sph4h + b4h) + 0.5
        o_ref[pl.ds(start, chunk), :] = x.astype(o_ref.dtype)
        return carry

    lax.fori_loop(0, n_chunks, body, 0)


def _derived_param_slab(params):
    """(11, C) raw params -> (16, C) slab with softplus/tanh pre-applied.

    Row layout: [sp(h1), b1, tanh(a1), sp(h2), b2, tanh(a2), sp(h3), b3, tanh(a3),
                 0.5*sp(h4), 0.5*b4, <5 zero-pad rows>]  (sublane-aligned to 16).
    """
    sp = jax.nn.softplus
    p = params.astype(jnp.float32)
    c = params.shape[1]
    rows = jnp.stack(
        [
            sp(p[0]), p[1], jnp.tanh(p[2]),        # f1
            sp(p[3]), p[4], jnp.tanh(p[5]),        # f2
            sp(p[6]), p[7], jnp.tanh(p[8]),        # f3
            0.5 * sp(p[9]), 0.5 * p[10],           # f4 (0.5 folded for tanh-sigmoid)
        ],
        axis=0,
    )                                              # (11, C)
    pad = jnp.zeros((5, c), dtype=jnp.float32)     # sublane-align to 16
    return jnp.concatenate([rows, pad], axis=0)    # (16, C)


def bit_estimator_single(x, params, *, max_tile_n=2048, chunk_rows=128):
    """x: (N, C), params: (11, C) raw (h/b/a) params -> (N, C), same dtype as x."""
    N, C = x.shape
    assert params.shape == (11, C)
    # TODO(synk): if production C is not a multiple of 128, pad C (or fold batch
    # into lanes) so output stores stay lane-dense; demo uses C=128 exactly.

    # Batch tile: aim for >= 2 grid steps (v7x dual-TC sharding), cap at
    # max_tile_n (1 MiB block at C=128 f32), 8-row sublane grain, and a multiple
    # of the inner register-resident chunk.
    half = -(-N // 2)                                    # cdiv(N, 2)
    tile_n = min(int(max_tile_n), max(8, _round_up(half, 8)))
    chunk = min(int(chunk_rows), tile_n)                 # multiple of 8 by construction
    tile_n = max(chunk, (tile_n // chunk) * chunk)       # tile_n % chunk == 0
    grid = pl.cdiv(N, tile_n)                            # ragged last block is clipped

    p_slab = _derived_param_slab(params)
    kernel = functools.partial(
        _bit_estimator_kernel, chunk=chunk, n_chunks=tile_n // chunk)

    return pl.pallas_call(
        kernel,
        out_shape=jax.ShapeDtypeStruct((N, C), x.dtype),
        grid_spec=pltpu.PrefetchScalarGridSpec(
            num_scalar_prefetch=0,
            grid=(grid,),
            in_specs=[
                pl.BlockSpec((tile_n, C), lambda i: (i, 0)),   # x tile
                pl.BlockSpec((16, C), lambda i: (0, 0)),       # resident param slab
            ],
            out_specs=pl.BlockSpec((tile_n, C), lambda i: (i, 0)),
        ),
        compiler_params=pltpu.CompilerParams(
            dimension_semantics=("parallel",)),
    )(x, p_slab)


def bit_estimator_single_ref(x, params):
    """Pure-JAX reference matching the PyTorch forward exactly (raw params)."""
    def nonfinal(x, h, b, a):
        xt = x * jax.nn.softplus(h) + b
        return xt + jnp.tanh(xt) * jnp.tanh(a)
    x = nonfinal(x, params[0], params[1], params[2])
    x = nonfinal(x, params[3], params[4], params[5])
    x = nonfinal(x, params[6], params[7], params[8])
    return jax.nn.sigmoid(x * jax.nn.softplus(params[9]) + params[10])


if __name__ == "__main__":
    channel = 128
    batch = 16

    key = jax.random.PRNGKey(0)
    kx, kp = jax.random.split(key)

    # Deterministic synthetic parameters: matches torch init normal_(0, 0.01)
    # in distribution; 11 rows of (channel,) params stacked together.
    params = jax.random.normal(kp, (11, channel), dtype=jnp.float32) * 0.01

    # The module operates on a "single dimension array" per sample -> (batch, channel).
    x = jax.random.normal(kx, (batch, channel), dtype=jnp.float32)

    out = bit_estimator_single(x, params)
    out = jax.block_until_ready(out)

    ref = bit_estimator_single_ref(x, params)
    assert out.shape == (batch, channel)
    assert jnp.allclose(out, ref, atol=1e-5, rtol=1e-5), "mismatch vs reference"

    print("KERNEL_OK")
</pallas_src>

<mosaic_0001>
module attributes {stable_mosaic.version = 11 : i64} {
  func.func @_bit_estimator_kernel(%arg0: i32, %arg1: memref<8x128xf32, #tpu.memory_space<vmem>>, %arg2: memref<16x128xf32, #tpu.memory_space<vmem>>, %arg3: memref<8x128xf32, #tpu.memory_space<vmem>>) attributes {dimension_semantics = [#tpu.dimension_semantics<parallel>], iteration_bounds = array<i64: 2>, scalar_prefetch = 0 : i64, scratch_operands = 0 : i64, tpu.core_type = #tpu.core_type<tc>, window_params = [{transform_indices = @transform_0, window_bounds = array<i64: 8, 128>}, {pipeline_mode = #tpu.pipeline_mode<synchronous>, transform_indices = @transform_1, window_bounds = array<i64: 16, 128>}, {transform_indices = @transform_2, window_bounds = array<i64: 8, 128>}]} {
    %c0 = arith.constant 0 : index
    %c0_0 = arith.constant 0 : index
    %0 = vector.load %arg2[%c0, %c0_0] : memref<16x128xf32, #tpu.memory_space<vmem>>, vector<16x128xf32>
    %1 = vector.extract_strided_slice %0 {offsets = [0, 0], sizes = [1, 128], strides = [1, 1]} : vector<16x128xf32> to vector<1x128xf32>
    %2 = vector.extract_strided_slice %0 {offsets = [1, 0], sizes = [1, 128], strides = [1, 1]} : vector<16x128xf32> to vector<1x128xf32>
    %3 = vector.extract_strided_slice %0 {offsets = [2, 0], sizes = [1, 128], strides = [1, 1]} : vector<16x128xf32> to vector<1x128xf32>
    %4 = vector.extract_strided_slice %0 {offsets = [3, 0], sizes = [1, 128], strides = [1, 1]} : vector<16x128xf32> to vector<1x128xf32>
    %5 = vector.extract_strided_slice %0 {offsets = [4, 0], sizes = [1, 128], strides = [1, 1]} : vector<16x128xf32> to vector<1x128xf32>
    %6 = vector.extract_strided_slice %0 {offsets = [5, 0], sizes = [1, 128], strides = [1, 1]} : vector<16x128xf32> to vector<1x128xf32>
    %7 = vector.extract_strided_slice %0 {offsets = [6, 0], sizes = [1, 128], strides = [1, 1]} : vector<16x128xf32> to vector<1x128xf32>
    %8 = vector.extract_strided_slice %0 {offsets = [7, 0], sizes = [1, 128], strides = [1, 1]} : vector<16x128xf32> to vector<1x128xf32>
    %9 = vector.extract_strided_slice %0 {offsets = [8, 0], sizes = [1, 128], strides = [1, 1]} : vector<16x128xf32> to vector<1x128xf32>
    %10 = vector.extract_strided_slice %0 {offsets = [9, 0], sizes = [1, 128], strides = [1, 1]} : vector<16x128xf32> to vector<1x128xf32>
    %11 = vector.extract_strided_slice %0 {offsets = [10, 0], sizes = [1, 128], strides = [1, 1]} : vector<16x128xf32> to vector<1x128xf32>
    %c0_i32 = arith.constant 0 : i32
    %c8_i32 = arith.constant 8 : i32
    %12 = arith.muli %c0_i32, %c8_i32 : i32
    %13 = tpu.assume_multiple %12, 8 : i32
    %14 = arith.index_cast %13 : i32 to index
    %c0_1 = arith.constant 0 : index
    %15 = vector.load %arg1[%14, %c0_1] : memref<8x128xf32, #tpu.memory_space<vmem>>, vector<8x128xf32>
    %16 = vector.broadcast %1 : vector<1x128xf32> to vector<8x128xf32>
    %17 = arith.mulf %15, %16 : vector<8x128xf32>
    %18 = vector.broadcast %2 : vector<1x128xf32> to vector<8x128xf32>
    %19 = arith.addf %17, %18 : vector<8x128xf32>
    %20 = math.tanh %19 : vector<8x128xf32>
    %21 = vector.broadcast %3 : vector<1x128xf32> to vector<8x128xf32>
    %22 = arith.mulf %20, %21 : vector<8x128xf32>
    %23 = arith.addf %19, %22 : vector<8x128xf32>
    %24 = vector.broadcast %4 : vector<1x128xf32> to vector<8x128xf32>
    %25 = arith.mulf %23, %24 : vector<8x128xf32>
    %26 = vector.broadcast %5 : vector<1x128xf32> to vector<8x128xf32>
    %27 = arith.addf %25, %26 : vector<8x128xf32>
    %28 = math.tanh %27 : vector<8x128xf32>
    %29 = vector.broadcast %6 : vector<1x128xf32> to vector<8x128xf32>
    %30 = arith.mulf %28, %29 : vector<8x128xf32>
    %31 = arith.addf %27, %30 : vector<8x128xf32>
    %32 = vector.broadcast %7 : vector<1x128xf32> to vector<8x128xf32>
    %33 = arith.mulf %31, %32 : vector<8x128xf32>
    %34 = vector.broadcast %8 : vector<1x128xf32> to vector<8x128xf32>
    %35 = arith.addf %33, %34 : vector<8x128xf32>
    %36 = math.tanh %35 : vector<8x128xf32>
    %37 = vector.broadcast %9 : vector<1x128xf32> to vector<8x128xf32>
    %38 = arith.mulf %36, %37 : vector<8x128xf32>
    %39 = arith.addf %35, %38 : vector<8x128xf32>
    %40 = vector.broadcast %10 : vector<1x128xf32> to vector<8x128xf32>
    %41 = arith.mulf %39, %40 : vector<8x128xf32>
    %42 = vector.broadcast %11 : vector<1x128xf32> to vector<8x128xf32>
    %43 = arith.addf %41, %42 : vector<8x128xf32>
    %44 = math.tanh %43 : vector<8x128xf32>
    %cst = arith.constant 5.000000e-01 : f32
    %45 = vector.broadcast %cst : f32 to vector<8x128xf32>
    %46 = arith.mulf %45, %44 : vector<8x128xf32>
    %cst_2 = arith.constant 5.000000e-01 : f32
    %47 = vector.broadcast %cst_2 : f32 to vector<8x128xf32>
    %48 = arith.addf %46, %47 : vector<8x128xf32>
    %49 = arith.index_cast %13 : i32 to index
    %c0_3 = arith.constant 0 : index
    %50 = vector.load %arg3[%49, %c0_3] : memref<8x128xf32, #tpu.memory_space<vmem>>, vector<8x128xf32>
    tpu.vector_store %arg3[%49, %c0_3], %48 {strides = array<i32>} : memref<8x128xf32, #tpu.memory_space<vmem>>, vector<8x128xf32>,
    %c1_i32 = arith.constant 1 : i32
    return
  }
  func.func @transform_0(%arg0: i32) -> (i32, i32) {
    %c0_i32 = arith.constant 0 : i32
    %c0_i32_0 = arith.constant 0 : i32
    return %arg0, %c0_i32 : i32, i32
  }
  func.func @transform_1(%arg0: i32) -> (i32, i32) {
    %c0_i32 = arith.constant 0 : i32
    %c0_i32_0 = arith.constant 0 : i32
    %c0_i32_1 = arith.constant 0 : i32
    return %c0_i32, %c0_i32_0 : i32, i32
  }
  func.func @transform_2(%arg0: i32) -> (i32, i32) {
    %c0_i32 = arith.constant 0 : i32
    %c0_i32_0 = arith.constant 0 : i32
    return %arg0, %c0_i32 : i32, i32
  }
}

</mosaic_0001>

<bundles_post_ra>
// kernel: tpu_custom_call.1
= control target key start
LH: loop header
LB: loop body
LE: loop exit
PB: predicated region body
PF: predicated region fallthrough
CT: control target
= control target key end

     0   :  { %7 = vsyncpa [#allocation3], 0  ;;  %s719_s0 = inlined_call_operand.hbm [shape: f32[16,128], index: 0, kind: input, shape index: {}]   ;;  %s720_s1 = inlined_call_operand.hbm [shape: f32[16,128], index: 1, kind: input, shape index: {}]   ;;  %s721_s2 = inlined_call_operand.hbm [shape: f32[16,128], index: 2, kind: output, shape index: {}]  }
   0x1   :  { %9 = vsyncpa [#allocation3 + $0x1], 0 }
   0x2   :  { %10 = vsyncpa [#allocation6], 0 }
   0x3   :  { %11 = vsyncpa [#allocation4], 0 }
   0x4   :  { %13 = vsyncpa [#allocation4 + $0x1], 0  ;;  %s561_s9 = smov 0   ;;  %s563_s10 = smov 0  }
   0x5   :  { %s565_s11 = smov 0   ;;  %s567_s12 = smov 0  }
   0x6 LB: > { %s582_s13 = sadd.s32 4294967295, %s539_s12   ;;  %s336_s14 = sadd.s32 4294967294, %s539_s12   ;;  %s539_s12 = sphi %s567_s12, %s743_s12   ;;  %s535_s11 = sphi %s565_s11, %s742_s11   ;;  %s531_s10 = sphi %s563_s10, %s741_s10   ;;  %s527_s9 = sphi %s561_s9, %s740_s9  }
   0x7   : > { %p39_p0 = scmp.ne.s32.totalorder %s531_s10, %s527_s9  ;;  %p722_p1 = scmp.eq.s32.totalorder %s582_s13, 0 }
   0x8   : > { %p90_p3 = scmp.eq.s32.totalorder %s336_s14, 1  ;;  %p337_p5 = scmp.ge.s32.totalorder %s539_s12, 1 }
   0x9   : > { %p591_p4 = por %p722_p1, %p39_p0  ;;  %p97_p7 = scmp.lt.s32.totalorder %s539_s12, 3 }
   0xa   : > { %p596_p6 = por %p90_p3, %p39_p0  ;;  %s541_s18 = smov [#allocation5]  }
   0xb   : > { %s726_s15 = scalar_select %p591_p4, 1, 0 }
   0xc   : > { %s727_s16 = scalar_select %p596_p6, 1, 0 }
   0xd   : > { %p601_p8 = pnand %p337_p5, %p97_p7  ;;  %s109_s19 = sshll.u32 %s541_s18, 4  ;;  %s110_s19 = int_to_ptr.vmem [resolvable:$true] %s109_s19 }
   0xe   : > { %s615_s21 = sadd.s32 1, %s539_s12   ;;  %s26_s22 = sadd.s32 1, %s535_s11 }
   0xf   : > { %s728_s17 = scalar_select %p601_p8, 1, 0 }
  0x10   : > { %p358_p9 = pneg %p601_p8  ;;  %s23_s23 = ssub.s32 %s539_s12, %s615_s21 }
  0x11   : > { %s428_s24 = scalar_lea.vmem %s110_s19, 256  ;;  %p436_p5 = scmp.lt.s32.totalorder %s110_s19, %s110_s19 }
  0x12   : > { %p610_p11 = pnand %p358_p9, %p722_p1  ;;  %p429_p13 = scmp.ne.s32.totalorder %s110_s19, %s428_s24 }
  0x13   : > { %p437_p7 = scmp.lt.s32.totalorder %s428_s24, %s428_s24 }
  0x14   : > { %p419_p12 = pneg %p610_p11 }
  0x15   : > { %p438_p10 = por %p437_p7, %p436_p5 }
  0x16   : > { %p431_p0 = pnand %p429_p13, %p419_p12 }
  0x18   : > { %p432_p3 = pneg %p431_p0 }
  0x1a   : > { %p439_p2 = pnand %p438_p10, %p432_p3 }
  0x1c   : > { %442 = shalt.err (!%p439_p2)
}
  0x1d   : > { %s542_s25 = smov 128   ;;  %s543_s26 = smov 8  }
  0x1e   : > { %361 = dma.hbm_to_vmem [thread:$0]  (!%p610_p11), %s720_s1, 256, %s110_s19, [#allocation6], %s542_s25, %s542_s25, %s543_s26  }
  0x1f   : > { %p24_p9 = scmp.eq.s32.totalorder %s23_s23, 0  ;;  %p33_p12 = scmp.ne.s32.totalorder %s535_s11, %s531_s10 }
  0x20   : > { %p34_p10 = scmp.eq.s32.totalorder %s539_s12, 0  ;;  %p371_p2 = scmp.lt.s32.totalorder %s539_s12, 2 }
  0x21   : > { %s632_s29 = scalar_select %p24_p9, %s535_s11, %s26_s22  }
  0x22   : > { %p35_p13 = por %p34_p10, %p33_p12  ;;  %p730_p0 = scmp.eq.s32.totalorder %s582_s13, 1 }
  0x23   : > { %s123_s3 = sand.u32 1, %s535_s11   ;;  %s341_s4 = sshll.u32 %s539_s12, 7 }
  0x24   : > { %p636_p3 = por %p730_p0, %p33_p12  ;;  %s340_s5 = sshll.u32 %s123_s3, 3 }
  0x25   : > { %s645_s8 = scalar_lea.hbm %s719_s0, %s341_s4  ;;  %s127_s14 = scalar_lea.vmem [#allocation2], %s340_s5 }
  0x26   : > { %s731_s30 = scalar_select %p636_p3, 1, 0 }
  0x27   : > { %s134_s18 = sshll.u32 %s127_s14, 4  ;;  %p647_p11 = pnand %p371_p2, %p35_p13  ;;  %s135_s18 = int_to_ptr.vmem [resolvable:$true] %s134_s18 }
  0x28   : > { %s124_s20 = scalar_lea.sflag [#allocation3], %s123_s3  ;;  %s443_s22 = scalar_lea.hbm %s645_s8, 128 }
  0x29   : > { %p444_p5 = scmp.ne.s32.totalorder %s645_s8, %s443_s22  ;;  %p445_p7 = pneg %p647_p11 }
  0x2a   : > { %s448_s25 = scalar_lea.hbm %s719_s0, 256  ;;  %p449_p10 = scmp.lt.s32.totalorder %s645_s8, %s719_s0 }
  0x2b   : > { %p446_p9 = pnand %p445_p7, %p444_p5  ;;  %p450_p2 = scmp.lt.s32.totalorder %s448_s25, %s443_s22 }
  0x2d   : > { %p447_p12 = pneg %p446_p9  ;;  %p451_p13 = por %p450_p2, %p449_p10 }
  0x2f   : > { %p452_p0 = pnand %p451_p13, %p447_p12 }
  0x31   : > { %455 = shalt.err (!%p452_p0)
}
  0x32   : > { %s456_s28 = scalar_lea.vmem %s135_s18, 128  ;;  %s544_s3 = smov [#allocation2]  }
  0x33   : > { %p457_p1 = scmp.ne.s32.totalorder %s135_s18, %s456_s28  ;;  %s461_s4 = sshll.u32 %s544_s3, 4  ;;  %s462_s4 = int_to_ptr.vmem [resolvable:$false] %s461_s4 }
  0x34   : > { %s463_s5 = scalar_lea.vmem %s462_s4, 256  ;;  %p464_p5 = scmp.lt.s32.totalorder %s135_s18, %s462_s4 }
  0x35   : > { %p459_p6 = pnand %p457_p1, %p445_p7  ;;  %p465_p9 = scmp.lt.s32.totalorder %s463_s5, %s456_s28 }
  0x37   : > { %p460_p3 = pneg %p459_p6  ;;  %p466_p4 = por %p465_p9, %p464_p5 }
  0x39   : > { %p467_p8 = pnand %p466_p4, %p460_p3 }
  0x3b   : > { %470 = shalt.err (!%p467_p8)
}
  0x3c   : > { %365 = dma.hbm_to_vmem [thread:$0]  (!%p647_p11), %s645_s8, 128, %s135_s18, %s124_s20  }
  0x3d   : > { %p733_p12 = scmp.ne.s32.totalorder %s728_s17, 0 }
  0x3e   : > { %s668_s6 = sand.u32 (!%p733_p12), 1, %s531_s10   ;;  %p734_p1 = scmp.ne.s32.totalorder (!%p733_p12), %s726_s15, 0 }
  0x3f   : > { %143 = sbr.rel (%p733_p12) target bundleno = 181 (0xb5), region = 28  ;;  %s343_s7 = sshll.u32 (!%p733_p12), %s668_s6, 3 }
  0x40   : > { %s146_s14 = scalar_lea.sflag (!%p733_p12), [#allocation3], %s668_s6  ;;  %s149_s22 = scalar_lea.vmem (!%p733_p12), [#allocation2], %s343_s7 }
  0x44   : > { %514 = dma.done.wait (%p734_p1), %s146_s14, 128  }
  0x45   : > { %516 = vsyncadd (%p734_p1), %s146_s14, 4294967168  ;;  %p735_p4 = scmp.eq.s32.totalorder %s582_s13, 0 }
  0x47   : > { %518 = dma.done.wait (%p735_p4), [#allocation6], 256   ;;  %p736_p6 = pmov %p735_p4 }
  0x48   : > { %v177_v0 = vlaneseq  ;;  %v174_v4 = vld [vmem:[#allocation5] sm:$0xff]  ;;  %v176_v5 = vld [vmem:[%s149_s22] sm:$0xff]  ;;  %v175_v32 = vld [vmem:[#allocation5 + $0x8] sm:$0xff]  ;;  %s173_s15 = scalar_lea.vmem [#allocation7], %s343_s7  ;;  %s347_s8 = sshll.u32 %s582_s13, 7 }
  0x49   : > { %520 = vsyncadd (%p736_p6), [#allocation6], 4294967040  ;;  %s256_s17 = sshll.u32 %s173_s15, 4  ;;  %s254_s20 = scalar_lea.hbm %s721_s2, %s347_s8  ;;  %s257_s17 = int_to_ptr.vmem [resolvable:$true] %s256_s17 }
  0x4a   : > { %v178_v1 = vshrl.u32 %v177_v0, 7  ;;  %s243_s23 = scalar_lea.sflag [#allocation4], %s668_s6  ;;  %s471_s24 = scalar_lea.vmem %s257_s17, 128 }
  0x4b   : > { %p472_p8 = scmp.ne.s32.totalorder %s257_s17, %s471_s24  ;;  %p737_p3 = scmp.ne.s32.totalorder %s731_s30, 0 }
  0x4c   : > { %v179_v2 = vsub.s32 0, %v178_v1  ;;  %v184_v3 = vsub.s32 1, %v178_v1  ;;  %v190_v10 = vsub.s32 2, %v178_v1  ;;  %v196_v12 = vsub.s32 3, %v178_v1  ;;  %s545_s25 = smov [#allocation7]  }
  0x4d   : > { %v201_v13 = vsub.s32 4, %v178_v1  ;;  %v207_v21 = vsub.s32 5, %v178_v1  ;;  %v213_v23 = vsub.s32 6, %v178_v1  ;;  %v218_v24 = vsub.s32 7, %v178_v1  ;;  %p473_p11 = pnand %p472_p8, %p737_p3  ;;  %s475_s26 = sshll.u32 %s545_s25, 4  ;;  %s476_s26 = int_to_ptr.vmem [resolvable:$false] %s475_s26 }
  0x4e   : > { %v180_v6 = vrot.slane %v174_v4, %v179_v2  ;;  %v185_v7 = vrot.slane %v174_v4, %v184_v3  ;;  %v191_v11 = vrot.slane %v174_v4, %v190_v10  ;;  %v197_v16 = vrot.slane %v174_v4, %v196_v12  ;;  %s477_s27 = scalar_lea.vmem %s476_s26, 256  ;;  %p478_p10 = scmp.lt.s32.totalorder %s257_s17, %s476_s26 }
  0x4f   : > { %v202_v18 = vrot.slane %v174_v4, %v201_v13  ;;  %v208_v22 = vrot.slane %v174_v4, %v207_v21  ;;  %v214_v27 = vrot.slane %v174_v4, %v213_v23  ;;  %v219_v29 = vrot.slane %v174_v4, %v218_v24  ;;  %p474_p7 = pneg %p473_p11  ;;  %p479_p2 = scmp.lt.s32.totalorder %s477_s27, %s471_s24 }
  0x50   : > { %v181_v8 = vmul.f32 %v180_v6, %v176_v5  ;;  %v225_v33 = vrot.slane %v175_v32, %v179_v2  ;;  %v231_v36 = vrot.slane %v175_v32, %v184_v3  ;;  %v236_v38 = vrot.slane %v175_v32, %v190_v10 }
  0x51   : > { %p480_p13 = por %p479_p2, %p478_p10 }
  0x52   : > { %v186_v9 = vadd.f32 %v185_v7, %v181_v8 }
  0x53   : > { %p481_p0 = pnand %p480_p13, %p474_p7 }
  0x54   : > { %409 = vtanh.f32 %v186_v9 }
  0x61   : > { %v410_v14 = vpop.eup %409 }
  0x62   : > { %v192_v15 = vmul.f32 %v410_v14, %v191_v11 }
  0x64   : > { %v193_v17 = vadd.f32 %v192_v15, %v186_v9 }
  0x66   : > { %v198_v19 = vmul.f32 %v197_v16, %v193_v17 }
  0x68   : > { %v203_v20 = vadd.f32 %v202_v18, %v198_v19 }
  0x6a   : > { %411 = vtanh.f32 %v203_v20 }
  0x77   : > { %v412_v25 = vpop.eup %411 }
  0x78   : > { %v209_v26 = vmul.f32 %v412_v25, %v208_v22 }
  0x7a   : > { %v210_v28 = vadd.f32 %v209_v26, %v203_v20 }
  0x7c   : > { %v215_v30 = vmul.f32 %v214_v27, %v210_v28 }
  0x7e   : > { %v220_v31 = vadd.f32 %v219_v29, %v215_v30 }
  0x80   : > { %413 = vtanh.f32 %v220_v31 }
  0x8d   : > { %v414_v34 = vpop.eup %413 }
  0x8e   : > { %v226_v35 = vmul.f32 %v414_v34, %v225_v33 }
  0x90   : > { %v227_v37 = vadd.f32 %v226_v35, %v220_v31 }
  0x92   : > { %v232_v39 = vmul.f32 %v231_v36, %v227_v37 }
  0x94   : > { %v237_v40 = vadd.f32 %v236_v38, %v232_v39 }
  0x96   : > { %415 = vtanh.f32 %v237_v40 }
  0xa3   : > { %v416_v41 = vpop.eup %415 }
  0xa4   : > { %v239_v42 = vmul.f32 0.5, %v416_v41 }
  0xa6   : > { %v240_v43 = vadd.f32 0.5, %v239_v42 }
  0xa8   : > { %241 = vst [vmem:[%s173_s15] sm:$0xff] %v240_v43 }
  0xa9   : > { %484 = shalt.err (!%p481_p0)
}
  0xaa   : > { %s485_s13 = scalar_lea.hbm %s254_s20, 128  ;;  %s489_s4 = scalar_lea.hbm %s721_s2, 256 }
  0xab   : > { %p486_p5 = scmp.ne.s32.totalorder %s254_s20, %s485_s13  ;;  %p490_p1 = scmp.lt.s32.totalorder %s254_s20, %s721_s2 }
  0xac   : > { %p491_p4 = scmp.lt.s32.totalorder %s489_s4, %s485_s13 }
  0xad   : > { %p487_p9 = pnand %p486_p5, %p737_p3 }
  0xae   : > { %p492_p6 = por %p491_p4, %p490_p1 }
  0xaf   : > { %p488_p12 = pneg %p487_p9 }
  0xb1   : > { %p493_p8 = pnand %p492_p6, %p488_p12 }
  0xb3   : > { %496 = shalt.err (!%p493_p8)
}
  0xb4   : > { %356 = dma.vmem_to_hbm [thread:$0]  (%p737_p3), %s257_s17, 128, %s254_s20, %s243_s23  }
  0xb5 PF: > { %s268_s7 = sand.u32 1, %s527_s9   ;;  %p738_p11 = scmp.ne.s32.totalorder %s727_s16, 0 }
  0xb6   : > { %p739_p7 = scmp.ge.s32.totalorder %s539_s12, 2  ;;  %s269_s14 = scalar_lea.sflag [#allocation4], %s268_s7 }
  0xb8   : > { %p367_p10 = pnand %p739_p7, %p738_p11 }
  0xba   : > { %p368_p2 = pneg %p367_p10 }
  0xbc   : > { %522 = dma.done.wait (%p368_p2), %s269_s14, 128  }
  0xbd   : > { %524 = vsyncadd (%p368_p2), %s269_s14, 4294967168  ;;  %p16_p13 = scmp.ge.s32.totalorder %s615_s21, 4   ;;  %s740_s9 = smov %s531_s10 }
  0xbe   : > { %s741_s10 = smov %s535_s11  ;;  %s742_s11 = smov %s632_s29 }
  0xbf   : > { %s743_s12 = smov %s615_s21  ;;  %18 = sbr.rel (!%p16_p13) target bundleno = 6 (0x6), region = 77 }
  0xc4   :  { %274 = vsyncpa [#allocation3], 1 }
  0xc5   :  { %276 = vsyncpa [#allocation3 + $0x1], 1 }
  0xc6   :  { %277 = vsyncpa [#allocation6], 1 }
  0xc7   :  { %278 = vsyncpa [#allocation4], 1 }
  0xc8   :  { %280 = vsyncpa [#allocation4 + $0x1], 1 }

</bundles_post_ra>
